<compile_context>
chip_gen: v7x
topology: tpu7x:2x2x1
jax: 0.10.0
libtpu: 0.0.40
codegen_flags: <defaults>
</compile_context>

<pallas_src>
import jax
import jax.numpy as jnp
from jax import lax
from jax.experimental import pallas as pl
from jax.experimental.pallas import tpu as pltpu

hidden_size = 64
input_size = 2
latent_size = 8

HID_PAD = 128            # hidden padded to a full 128-lane width (lane 64 = b2 sentinel)
CHUNK = 256              # rows per in-kernel sub-chunk (f32 hidden chunk = 32 vregs)
TB_DEFAULT = 8192        # production batch tile; sweep 4096..16384 on real workloads
# Lane-padded VMEM per batch row: 2 buffers * (z: 128 lanes * 2B) + 2 * (out: 128 * 4B)
BYTES_PER_ROW = 2 * (128 * 2) + 2 * (128 * 4)        # = 1536 B/row
VMEM_BUDGET = 24 << 20   # tile-VMEM cap: safe on v7x (64 MiB phys / 32 MiB scoped)
VMEM_LIMIT = 32 << 20    # explicit scoped-VMEM limit passed to the compiler


def _round_up(x, m):
    return ((x + m - 1) // m) * m


def _round_down(x, m):
    return (x // m) * m


def _resident_spec(shape):
    """BlockSpec for an index-invariant operand: fetched once, single VMEM buffer."""
    idx = lambda i: (0,) * len(shape)
    try:
        return pl.BlockSpec(shape, idx, pipeline_mode=pl.Buffered(1))
    except TypeError:  # older BlockSpec without pipeline_mode
        return pl.BlockSpec(shape, idx)


def decoder_kernel(z_ref, w1_ref, w2_ref, b1_ref, o_ref):
    # z:  (tb, latent)       bf16
    # w1: (latent, HID_PAD)  bf16 (cols >= hidden_size are zero)
    # w2: (HID_PAD, out)     bf16 (row hidden_size carries b2; rows above are zero)
    # b1: (1, HID_PAD)       f32  (b1 zero-padded; lane hidden_size holds the 1.0 sentinel)
    tb = z_ref.shape[0]
    chunk = min(CHUNK, tb)
    n_chunks = tb // chunk

    w1 = w1_ref[...]
    w2 = w2_ref[...]
    b1 = b1_ref[...]

    def body(c, carry):
        r = pl.multiple_of(c * chunk, chunk)
        zc = z_ref[pl.ds(r, chunk), :]
        h = jnp.dot(zc, w1, preferred_element_type=jnp.float32)
        # bias + ReLU in f32 (no bf16 VPU on v5e); materialize bf16 only for the MXU.
        h = jnp.maximum(h + b1, 0.0).astype(jnp.bfloat16)
        oc = jnp.dot(h, w2, preferred_element_type=jnp.float32)   # b2 added via sentinel row
        o_ref[pl.ds(r, chunk), :] = oc.astype(o_ref.dtype)
        return carry

    lax.fori_loop(0, n_chunks, body, None)


def _choose_tile(B, tb_req):
    """VMEM-aware batch tile; prefers >= 2 grid steps so both v7x TCs get work."""
    B16 = _round_up(max(B, 16), 16)
    tb = min(tb_req, B16)                                        # never exceed padded batch
    tb = min(tb, _round_down(VMEM_BUDGET // BYTES_PER_ROW, CHUNK))  # VMEM cap (v7x-safe)
    if B16 >= 32:
        tb = min(tb, _round_up(B16 // 2, 16))                    # >= 2 grid steps
    if tb >= CHUNK:
        tb = _round_down(tb, CHUNK)                              # divisible by sub-chunk
    else:
        tb = _round_down(tb, 16)                                 # bf16 sublane packing
    return max(tb, 16)


def decoder_forward(z, w1, b1, w2, b2, tb=TB_DEFAULT):
    """z: (B, latent_size) f32 -> (B, input_size) f32. Weights in (in, out) layout."""
    B, L = z.shape
    H = w1.shape[1]
    O = w2.shape[1]
    assert H + 1 <= HID_PAD, "need one spare padded hidden lane for the b2 sentinel"

    tb = _choose_tile(B, tb)
    B_pad = _round_up(B, tb)

    # Batch padded to a tile multiple; z streamed as bf16 (native MXU input precision).
    z_p = z if B_pad == B else jnp.pad(z, ((0, B_pad - B), (0, 0)))
    z_p = z_p.astype(jnp.bfloat16)

    # Hidden padded H -> HID_PAD. Lane H of b1_row is a 1.0 sentinel (w1 column H is zero,
    # so it survives ReLU exactly) and row H of w2 carries b2 => b2 folded into matmul 2.
    w1_p = jnp.pad(w1, ((0, 0), (0, HID_PAD - H))).astype(jnp.bfloat16)
    w2_p = jnp.zeros((HID_PAD, O), jnp.float32)
    w2_p = w2_p.at[:H, :].set(w2)
    w2_p = w2_p.at[H, :].set(b2.reshape(-1))
    w2_p = w2_p.astype(jnp.bfloat16)
    b1_row = jnp.zeros((1, HID_PAD), jnp.float32)
    b1_row = b1_row.at[0, :H].set(b1.reshape(-1))
    b1_row = b1_row.at[0, H].set(1.0)

    grid = (B_pad // tb,)
    flops = 2 * B_pad * (L * HID_PAD + HID_PAD * O)
    bytes_accessed = (z_p.size * 2 + B_pad * O * 4
                      + w1_p.size * 2 + w2_p.size * 2 + b1_row.size * 4)

    out = pl.pallas_call(
        decoder_kernel,
        out_shape=jax.ShapeDtypeStruct((B_pad, O), jnp.float32),
        grid_spec=pltpu.PrefetchScalarGridSpec(
            num_scalar_prefetch=0,
            grid=grid,
            in_specs=[
                pl.BlockSpec((tb, L), lambda i: (i, 0)),   # z: streamed, double-buffered
                _resident_spec((L, HID_PAD)),              # w1: fetched once
                _resident_spec((HID_PAD, O)),              # w2 (+b2 row): fetched once
                _resident_spec((1, HID_PAD)),              # b1 (+sentinel): fetched once
            ],
            out_specs=pl.BlockSpec((tb, O), lambda i: (i, 0)),
        ),
        compiler_params=pltpu.CompilerParams(
            dimension_semantics=("parallel",),             # 2-TC sharding on v7x
            vmem_limit_bytes=VMEM_LIMIT),
        cost_estimate=pl.CostEstimate(
            flops=flops, transcendentals=0, bytes_accessed=bytes_accessed),
    )(z_p, w1_p, w2_p, b1_row)

    return out[:B]


def init_params(key):
    """Deterministic init mirroring torch.nn.Linear's U(-1/sqrt(fan_in), 1/sqrt(fan_in)).

    Weights kept in (in_features, out_features) layout for the kernel.
    """
    k1, k2, k3, k4 = jax.random.split(key, 4)
    bound1 = 1.0 / jnp.sqrt(jnp.float32(latent_size))
    bound2 = 1.0 / jnp.sqrt(jnp.float32(hidden_size))
    w1 = jax.random.uniform(k1, (latent_size, hidden_size), jnp.float32, -bound1, bound1)
    b1 = jax.random.uniform(k2, (1, hidden_size), jnp.float32, -bound1, bound1)
    w2 = jax.random.uniform(k3, (hidden_size, input_size), jnp.float32, -bound2, bound2)
    b2 = jax.random.uniform(k4, (1, input_size), jnp.float32, -bound2, bound2)
    return w1, b1, w2, b2


def reference_forward(z, w1, b1, w2, b2):
    h = jnp.maximum(z @ w1 + b1, 0.0)
    return h @ w2 + b2


if __name__ == "__main__":
    key = jax.random.PRNGKey(0)
    kz, kp = jax.random.split(key)

    batch = 40  # small demo batch; auto tile logic picks tb=32 -> 2-step grid + padding path
    z = jax.random.normal(kz, (batch, latent_size), dtype=jnp.float32)
    w1, b1, w2, b2 = init_params(kp)

    out = decoder_forward(z, w1, b1, w2, b2)
    out = jax.block_until_ready(out)

    ref = reference_forward(z, w1, b1, w2, b2)  # pure f32 reference
    assert out.shape == (batch, input_size)
    # bf16 input/weight streams -> compare against f32 reference at bf16-level tolerance.
    assert jnp.allclose(out, ref, atol=5e-2, rtol=5e-2)

    print("KERNEL_OK")
</pallas_src>

<mosaic_0001>
module attributes {stable_mosaic.version = 11 : i64} {
  func.func @decoder_kernel(%arg0: i32, %arg1: memref<32x8xbf16, #tpu.memory_space<vmem>>, %arg2: memref<8x128xbf16, #tpu.memory_space<vmem>>, %arg3: memref<128x2xbf16, #tpu.memory_space<vmem>>, %arg4: memref<1x128xf32, #tpu.memory_space<vmem>>, %arg5: memref<32x2xf32, #tpu.memory_space<vmem>>) attributes {dimension_semantics = [#tpu.dimension_semantics<parallel>], iteration_bounds = array<i64: 2>, scalar_prefetch = 0 : i64, scratch_operands = 0 : i64, tpu.core_type = #tpu.core_type<tc>, window_params = [{transform_indices = @transform_0, window_bounds = array<i64: 32, 8>}, {pipeline_mode = #tpu.pipeline_mode<synchronous>, transform_indices = @transform_1, window_bounds = array<i64: 8, 128>}, {pipeline_mode = #tpu.pipeline_mode<synchronous>, transform_indices = @transform_2, window_bounds = array<i64: 128, 2>}, {pipeline_mode = #tpu.pipeline_mode<synchronous>, transform_indices = @transform_3, window_bounds = array<i64: 1, 128>}, {transform_indices = @transform_4, window_bounds = array<i64: 32, 2>}]} {
    %c0 = arith.constant 0 : index
    %c0_0 = arith.constant 0 : index
    %0 = vector.load %arg2[%c0, %c0_0] : memref<8x128xbf16, #tpu.memory_space<vmem>>, vector<8x128xbf16>
    %c0_1 = arith.constant 0 : index
    %c0_2 = arith.constant 0 : index
    %1 = vector.load %arg3[%c0_1, %c0_2] : memref<128x2xbf16, #tpu.memory_space<vmem>>, vector<128x2xbf16>
    %c0_3 = arith.constant 0 : index
    %c0_4 = arith.constant 0 : index
    %2 = vector.load %arg4[%c0_3, %c0_4] : memref<1x128xf32, #tpu.memory_space<vmem>>, vector<1x128xf32>
    %c0_i32 = arith.constant 0 : i32
    %c32_i32 = arith.constant 32 : i32
    %3 = arith.muli %c0_i32, %c32_i32 : i32
    %4 = tpu.assume_multiple %3, 32 : i32
    %5 = arith.index_cast %4 : i32 to index
    %c0_5 = arith.constant 0 : index
    %6 = vector.load %arg1[%5, %c0_5] : memref<32x8xbf16, #tpu.memory_space<vmem>>, vector<32x8xbf16>
    %cst = arith.constant dense<0.000000e+00> : vector<32x128xf32>
    %7 = tpu.matmul %6, %0, %cst {dimension_numbers = #tpu.dot_dimension_numbers<[1], [0], [0], [1], [0, 0, 1, 1], [], []>} : vector<32x8xbf16>, vector<8x128xbf16>, vector<32x128xf32> -> vector<32x128xf32>
    %8 = vector.broadcast %2 : vector<1x128xf32> to vector<32x128xf32>
    %9 = arith.addf %7, %8 : vector<32x128xf32>
    %cst_6 = arith.constant 0.000000e+00 : f32
    %10 = vector.broadcast %cst_6 : f32 to vector<32x128xf32>
    %11 = arith.maximumf %9, %10 : vector<32x128xf32>
    %12 = arith.truncf %11 : vector<32x128xf32> to vector<32x128xbf16>
    %cst_7 = arith.constant dense<0.000000e+00> : vector<32x2xf32>
    %13 = tpu.matmul %12, %1, %cst_7 {dimension_numbers = #tpu.dot_dimension_numbers<[1], [0], [0], [1], [0, 0, 1, 1], [], []>} : vector<32x128xbf16>, vector<128x2xbf16>, vector<32x2xf32> -> vector<32x2xf32>
    %14 = arith.index_cast %4 : i32 to index
    %c0_8 = arith.constant 0 : index
    %15 = vector.load %arg5[%14, %c0_8] : memref<32x2xf32, #tpu.memory_space<vmem>>, vector<32x2xf32>
    tpu.vector_store %arg5[%14, %c0_8], %13 {strides = array<i32>} : memref<32x2xf32, #tpu.memory_space<vmem>>, vector<32x2xf32>,
    %c1_i32 = arith.constant 1 : i32
    return
  }
  func.func @transform_0(%arg0: i32) -> (i32, i32) {
    %c0_i32 = arith.constant 0 : i32
    %c0_i32_0 = arith.constant 0 : i32
    return %arg0, %c0_i32 : i32, i32
  }
  func.func @transform_1(%arg0: i32) -> (i32, i32) {
    %c0_i32 = arith.constant 0 : i32
    %c0_i32_0 = arith.constant 0 : i32
    %c0_i32_1 = arith.constant 0 : i32
    return %c0_i32, %c0_i32_0 : i32, i32
  }
  func.func @transform_2(%arg0: i32) -> (i32, i32) {
    %c0_i32 = arith.constant 0 : i32
    %c0_i32_0 = arith.constant 0 : i32
    %c0_i32_1 = arith.constant 0 : i32
    return %c0_i32, %c0_i32_0 : i32, i32
  }
  func.func @transform_3(%arg0: i32) -> (i32, i32) {
    %c0_i32 = arith.constant 0 : i32
    %c0_i32_0 = arith.constant 0 : i32
    %c0_i32_1 = arith.constant 0 : i32
    return %c0_i32, %c0_i32_0 : i32, i32
  }
  func.func @transform_4(%arg0: i32) -> (i32, i32) {
    %c0_i32 = arith.constant 0 : i32
    %c0_i32_0 = arith.constant 0 : i32
    return %arg0, %c0_i32 : i32, i32
  }
}

</mosaic_0001>

<bundles_post_ra>
// kernel: tpu_custom_call.1
= control target key start
LH: loop header
LB: loop body
LE: loop exit
PB: predicated region body
PF: predicated region fallthrough
CT: control target
= control target key end

     0   :  { %s579_s15 = smov 0   ;;  %s630_s0 = inlined_call_operand.vmem [shape: bf16[64,8], index: 0, kind: input, shape index: {}]   ;;  %s631_s1 = inlined_call_operand.vmem [shape: bf16[8,128], index: 1, kind: input, shape index: {}]   ;;  %s632_s2 = inlined_call_operand.vmem [shape: bf16[128,2], index: 2, kind: input, shape index: {}]   ;;  %s633_s3 = inlined_call_operand.vmem [shape: f32[1,128], index: 3, kind: input, shape index: {}]   ;;  %s634_s4 = inlined_call_operand.vmem [shape: f32[64,2], index: 4, kind: output, shape index: {}]  }
   0x1 LB: > { %s464_s16 = sadd.s32 4294967295, %s552_s15   ;;  %p468_p0 = scmp.ge.s32.totalorder %s552_s15, 1  ;;  %s552_s15 = sphi %s579_s15, %s14_s15  }
   0x2   : > { %p163_p1 = scmp.lt.s32.totalorder %s552_s15, 3 }
   0x4   : > { %p164_p2 = pnand %p468_p0, %p163_p1 }
   0x5   : > { %v202_v0 = vld [vmem:[%s631_s1] sm:$0xf] (!%p164_p2)  ;;  %vm247_vm0 = vcmask (!%p164_p2), 1043456   ;;  %s469_s19 = sshll.u32 (!%p164_p2), %s464_s16, 2  ;;  %v539_v3 = vld [vmem:[%s632_s2 + $0x8] sm:$0xff] (!%p164_p2)   ;;  %v540_v4 = vld [vmem:[%s632_s2 + $0x10] sm:$0xff] (!%p164_p2)  }
   0x6   : > { %167 = sbr.rel (%p164_p2) target bundleno = 456 (0x1c8), region = 36  ;;  %v538_v1 = vld [vmem:[%s632_s2] sm:$0xff] (!%p164_p2)   ;;  %527 = vmatprep.subr.msk.bf16.mxu0 (!%p164_p2), %vm247_vm0, %v202_v0  ;;  %v249_v2 = vsel (!%p164_p2), %vm247_vm0, %v202_v0, 0  ;;  %p190_p3 = scmp.lt.s32.totalorder (!%p164_p2), %s469_s19, 7  ;;  %vm240_vm1 = vcmask (!%p164_p2), 64512   ;;  %v541_v5 = vld [vmem:[%s632_s2 + $0x18] sm:$0xff] (!%p164_p2)  }
   0x7   : > { %502 = vmatpush3.bf16.msra.mxu0 (!%p164_p2), %v249_v2  ;;  %507 = vmatprep.subr.bf16.mxu1 (!%p164_p2), %v538_v1  ;;  %v542_v8 = vld [vmem:[%s632_s2 + $0x20] sm:$0xff] (!%p164_p2)   ;;  %v543_v9 = vld [vmem:[%s632_s2 + $0x28] sm:$0xff] (!%p164_p2)   ;;  %v544_v10 = vld [vmem:[%s632_s2 + $0x30] sm:$0xff] (!%p164_p2)   ;;  %vm403_vm2 = vcmask (!%p164_p2), 15360  }
   0x8   : > { %508 = vmatpush3.bf16.msra.mxu1 (!%p164_p2), %v538_v1  ;;  %v545_v11 = vld [vmem:[%s632_s2 + $0x38] sm:$0xff] (!%p164_p2)   ;;  %v473_v12 = vld [vmem:[%s633_s3] ss:$0 sm:$0xff] (!%p164_p2) }
   0x9   : > { %509 = vmatprep.subr.bf16.mxu1 (!%p164_p2), %v539_v3 }
   0xc   : > { %510 = vmatpush3.bf16.msra.mxu1 (!%p164_p2), %v539_v3 }
   0xd   : > { %s636_s19 = smov (!%p190_p3, %s469_s19), 7  ;;  %511 = vmatprep.subr.bf16.mxu1 %v540_v4 }
   0xe   : > { %s470_s26 = sshll.u32 %s636_s19, 2  ;;  %s472_s17 = sshll.u32 %s636_s19, 3 }
   0xf   : > { %s193_s29 = scalar_lea.vmem %s630_s0, %s470_s26  ;;  %s199_s21 = scalar_lea.vmem %s634_s4, %s472_s17 }
  0x10   : > { %v536_v6 = vld [vmem:[%s193_s29] sm:$0xff]   ;;  %v537_v7 = vld [vmem:[%s193_s29 + $0x8] sm:$0xff]   ;;  %512 = vmatpush3.bf16.msra.mxu1 %v540_v4 }
  0x11   : > { %503 = vmatprep.mubr.msk.bf16.mxu0 %vm240_vm1, %v536_v6  ;;  %513 = vmatprep.subr.bf16.mxu1 %v541_v5 }
  0x12   : > { %504 = vmatmul.mubr.msk.bf16.vlgmr.msra.gmra.mrb[0].mxu0 %vm240_vm1, %v537_v7 }
  0x14   : > { %514 = vmatpush3.bf16.msra.mxu1 %v541_v5 }
  0x15   : > { %515 = vmatprep.subr.bf16.mxu1 %v542_v8 }
  0x18   : > { %516 = vmatpush3.bf16.msra.mxu1 %v542_v8 }
  0x19   : > { %517 = vmatprep.subr.bf16.mxu1 %v543_v9 }
  0x1c   : > { %518 = vmatpush3.bf16.msra.mxu1 %v543_v9 }
  0x1d   : > { %519 = vmatprep.subr.bf16.mxu1 %v544_v10 }
  0x20   : > { %520 = vmatpush3.bf16.msra.mxu1 %v544_v10 }
  0x21   : > { %521 = vmatprep.subr.bf16.mxu1 %v545_v11 }
  0x24   : > { %522 = vmatpush3.bf16.msra.mxu1 %v545_v11 }
  0xe5   : > { %v505_v13 = vpop.f32.mrb[0].mxu0 }
  0xe6   : > { %v294_v14 = vadd.f32 %v505_v13, %v473_v12  ;;  %v285_v15 = vpop.f32.mrb[1].mxu0 }
  0xe7   : > { %v286_v16 = vadd.f32 %v473_v12, %v285_v15  ;;  %v506_v17 = vpop.f32.mrb[2].mxu0 }
  0xe8   : > { %v297_v18 = vadd.f32 %v506_v17, %v473_v12  ;;  %v288_v19 = vpop.f32.mrb[3].mxu0  ;;  %v302_v21 = vmax.f32 %v294_v14, 0.0 }
  0xe9   : > { %v289_v20 = vadd.f32 %v473_v12, %v288_v19  ;;  %v300_v23 = vmax.f32 %v286_v16, 0.0 }
  0xea   : > { %v303_v22 = vmax.f32 %v297_v18, 0.0 }
  0xeb   : > { %v301_v24 = vmax.f32 %v289_v20, 0.0 }
  0xec   : > { %v305_v25 = vpack.c.bf16 %v303_v22, %v302_v21 }
  0xed   : > { %v304_v26 = vpack.c.bf16 %v301_v24, %v300_v23 }
  0xef   : > { %523 = vmatprep.mubr.bf16.mxu1 %v304_v26 }
  0xf0   : > { %524 = vmatmul.mubr.bf16.vlgmr.msra.gmra.mrb[0].mxu1 %v305_v25 }
 0x1c3   : > { %v525_v27 = vpop.f32.mrb[0].mxu1 }
 0x1c4   : > { %v388_v28 = vpop.f32.mrb[1].mxu1  ;;  %406 = vst.msk [vmem:[%s199_s21 + $0x10] sm:$0xff] %vm403_vm2, %v525_v27 }
 0x1c5   : > { %404 = vst.msk [vmem:[%s199_s21] sm:$0xff] %vm403_vm2, %v388_v28  ;;  %v526_v29 = vpop.f32.mrb[2].mxu1 }
 0x1c6   : > { %v391_v30 = vpop.f32.mrb[3].mxu1  ;;  %407 = vst.msk [vmem:[%s199_s21 + $0x18] sm:$0xff] %vm403_vm2, %v526_v29 }
 0x1c7   : > { %405 = vst.msk [vmem:[%s199_s21 + $0x8] sm:$0xff] %vm403_vm2, %v391_v30 }
 0x1c8 PF: > { %s14_s15 = sadd.s32 1, %s552_s15  }
 0x1c9   : > { %p11_p4 = scmp.ge.s32.totalorder %s14_s15, 4  }
 0x1cb   :  { %13 = sbr.rel (!%p11_p4) target bundleno = 1 (0x1), region = 66 }

</bundles_post_ra>
